<compile_context>
chip_gen: v7x
topology: tpu7x:2x2x1
jax: 0.10.0
libtpu: 0.0.40
codegen_flags: <defaults>
</compile_context>

<pallas_src>
import jax
import jax.numpy as jnp
from jax.experimental import pallas as pl
from jax.experimental.pallas import tpu as pltpu

_LANE = 128
_SUBLANE = 8
_TM_MAX = 512
_TN_MAX = 512
_TK_MAX = 512
_VMEM_BUDGET = 40 << 20        # target double-buffered working set (safe on v7x 64 MiB)
_VMEM_LIMIT_BYTES = 48 << 20   # explicit scoped-VMEM limit (v5e default is only 16 MiB)


def _round_up(x: int, m: int) -> int:
    return (x + m - 1) // m * m


# ----------------------------- kernels ------------------------------------ #

def _linear_kernel_f32out(x_ref, w_ref, b_ref, o_ref):
    """Accumulate directly into the resident f32 output block (no scratch)."""
    k = pl.program_id(2)

    @pl.when(k == 0)
    def _init():
        o_ref[...] = jnp.broadcast_to(b_ref[...], o_ref.shape).astype(o_ref.dtype)

    # x_ref: (tm, tk), w_ref: (tk, tn)  ->  (tm, tn) on the MXU.
    o_ref[...] += jnp.dot(x_ref[...], w_ref[...],
                          preferred_element_type=jnp.float32)


def _linear_kernel_acc(x_ref, w_ref, b_ref, o_ref, acc_ref):
    """f32 VMEM accumulator variant for non-f32 output dtypes."""
    k = pl.program_id(2)

    @pl.when(k == 0)
    def _init():
        acc_ref[...] = jnp.zeros_like(acc_ref)

    acc_ref[...] += jnp.dot(x_ref[...], w_ref[...],
                            preferred_element_type=jnp.float32)

    @pl.when(k == pl.num_programs(2) - 1)
    def _finalize():
        o_ref[...] = (acc_ref[...] + b_ref[...]).astype(o_ref.dtype)


# ----------------------------- module wrapper ------------------------------ #

class LinearRegressionPallas:
    """Pallas equivalent of `linear_regression` (nn.Linear forward).

    Weight transpose + padding (and optional bf16 cast) happen once here, not
    on every forward call.
    """

    def __init__(self, weight, bias, *, compute_dtype=jnp.float32):
        # weight: (out_dim, in_dim) PyTorch layout; bias: (out_dim,)
        N, K = weight.shape
        assert bias.shape == (N,)
        self.out_dim = N
        self.in_dim = K
        self.compute_dtype = jnp.dtype(compute_dtype)
        itemsize = self.compute_dtype.itemsize

        # Tile plan for the N / K axes (lane-/MXU-aligned), shrunk if the
        # worst-case (tm = _TM_MAX) double-buffered footprint exceeds budget.
        tn = min(_round_up(N, _LANE), _TN_MAX)
        tk = min(_round_up(K, _LANE), _TK_MAX)

        def footprint(tm, tn_, tk_):
            return (2 * (tm * tk_ + tk_ * tn_ + tm * tn_) * itemsize
                    + tm * tn_ * 4              # f32 accumulator (worst case)
                    + 2 * tn_ * 4)              # bias row (f32), double-buffered

        while footprint(_TM_MAX, tn, tk) > _VMEM_BUDGET and (tn > _LANE or tk > _LANE):
            if tk >= tn and tk > _LANE:
                tk //= 2
            else:
                tn //= 2

        self.tn, self.tk = tn, tk
        self.N_pad = _round_up(N, tn)
        self.K_pad = _round_up(K, tk)

        # One-time transpose to (K, N) + zero-pad + cast (hoisted out of the
        # per-call path).  Zero padding never changes the valid outputs.
        w_t = jnp.asarray(weight).T                            # (K, N)
        self.w_t_p = jnp.pad(
            w_t, ((0, self.K_pad - K), (0, self.N_pad - N))
        ).astype(self.compute_dtype)
        self.b_p = jnp.pad(
            jnp.asarray(bias, dtype=jnp.float32).reshape(1, N),
            ((0, 0), (0, self.N_pad - N)))

    def __call__(self, x):
        # nn.Linear supports arbitrary leading dims; flatten them into a batch.
        lead_shape = x.shape[:-1]
        K = x.shape[-1]
        assert K == self.in_dim, "in_dim mismatch between x and weight"
        out_dtype = x.dtype
        x2 = x.reshape(-1, K)
        B = x2.shape[0]

        tm = min(_round_up(B, _SUBLANE), _TM_MAX)
        tn, tk = self.tn, self.tk
        M_pad = _round_up(B, tm)
        N_pad, K_pad = self.N_pad, self.K_pad

        # v7x: give the parallel portion >= 2 grid steps when shapes allow so
        # the second TensorCore does not idle (no-op on v5e/v6e).
        if (M_pad // tm == 1 and N_pad // tn == 1
                and (N_pad // 2) % _LANE == 0):
            tn = N_pad // 2

        # Per-call padding of x only (weight/bias were padded at init).
        x_p = x2
        if M_pad != B or K_pad != K:
            x_p = jnp.pad(x2, ((0, M_pad - B), (0, K_pad - K)))
        x_p = x_p.astype(self.compute_dtype)

        grid = (M_pad // tm, N_pad // tn, K_pad // tk)
        itemsize = self.compute_dtype.itemsize
        # Account for re-streaming: x re-read once per N tile, W once per M tile.
        bytes_accessed = (
            itemsize * M_pad * K_pad * (N_pad // tn)      # x
            + itemsize * K_pad * N_pad * (M_pad // tm)    # W
            + 4 * N_pad                                   # bias
            + jnp.dtype(out_dtype).itemsize * M_pad * N_pad)  # out

        f32_out = jnp.dtype(out_dtype) == jnp.float32
        kernel = _linear_kernel_f32out if f32_out else _linear_kernel_acc
        scratch = [] if f32_out else [pltpu.VMEM((tm, tn), jnp.float32)]

        out_padded = pl.pallas_call(
            kernel,
            out_shape=jax.ShapeDtypeStruct((M_pad, N_pad), out_dtype),
            grid=grid,
            in_specs=[
                pl.BlockSpec((tm, tk), lambda i, j, k: (i, k)),   # x tile
                pl.BlockSpec((tk, tn), lambda i, j, k: (k, j)),   # W^T tile (K, N)
                pl.BlockSpec((1, tn), lambda i, j, k: (0, j)),    # bias row
            ],
            out_specs=pl.BlockSpec((tm, tn), lambda i, j, k: (i, j)),
            scratch_shapes=scratch,
            compiler_params=pltpu.CompilerParams(
                dimension_semantics=("parallel", "parallel", "arbitrary"),
                vmem_limit_bytes=_VMEM_LIMIT_BYTES),
            cost_estimate=pl.CostEstimate(
                flops=2 * M_pad * N_pad * K_pad,
                bytes_accessed=int(bytes_accessed),
                transcendentals=0),
        )(x_p, self.w_t_p, self.b_p)

        out = out_padded[:B, :self.out_dim]
        return out.reshape(*lead_shape, self.out_dim)


def linear_regression_forward(x, weight, bias, *, compute_dtype=jnp.float32):
    """Convenience one-shot wrapper (params prepared inline)."""
    return LinearRegressionPallas(weight, bias, compute_dtype=compute_dtype)(x)


if __name__ == "__main__":
    key = jax.random.PRNGKey(0)
    kx, kw, kb = jax.random.split(key, 3)

    batch, in_dim, out_dim = 8, 32, 16

    x = jax.random.normal(kx, (batch, in_dim), dtype=jnp.float32)
    # Deterministic init mimicking nn.Linear's uniform(-1/sqrt(in), 1/sqrt(in))
    bound = 1.0 / (in_dim ** 0.5)
    weight = jax.random.uniform(kw, (out_dim, in_dim), dtype=jnp.float32,
                                minval=-bound, maxval=bound)
    bias = jax.random.uniform(kb, (out_dim,), dtype=jnp.float32,
                              minval=-bound, maxval=bound)

    # Params are transposed/padded once here (hoisted out of the call path).
    model = LinearRegressionPallas(weight, bias, compute_dtype=jnp.float32)
    out = jax.block_until_ready(model(x))

    # Correctness check against plain-JAX reference.
    ref = x @ weight.T + bias
    assert out.shape == (batch, out_dim)
    assert jnp.allclose(out, ref, atol=1e-5, rtol=1e-5)

    print("KERNEL_OK")
</pallas_src>

<mosaic_0001>
module attributes {stable_mosaic.version = 11 : i64} {
  func.func @_linear_kernel_f32out(%arg0: i32, %arg1: i32, %arg2: i32, %arg3: memref<8x128xf32, #tpu.memory_space<vmem>>, %arg4: memref<128x128xf32, #tpu.memory_space<vmem>>, %arg5: memref<1x128xf32, #tpu.memory_space<vmem>>, %arg6: memref<8x128xf32, #tpu.memory_space<vmem>>) attributes {dimension_semantics = [#tpu.dimension_semantics<parallel>, #tpu.dimension_semantics<parallel>, #tpu.dimension_semantics<arbitrary>], iteration_bounds = array<i64: 1, 1, 1>, scalar_prefetch = 0 : i64, scratch_operands = 0 : i64, tpu.core_type = #tpu.core_type<tc>, window_params = [{transform_indices = @transform_0, window_bounds = array<i64: 8, 128>}, {transform_indices = @transform_1, window_bounds = array<i64: 128, 128>}, {transform_indices = @transform_2, window_bounds = array<i64: 1, 128>}, {transform_indices = @transform_3, window_bounds = array<i64: 8, 128>}]} {
    %c0_i32 = arith.constant 0 : i32
    %0 = arith.cmpi eq, %arg2, %c0_i32 : i32
    %1 = arith.extui %0 : i1 to i32
    %c0_i32_0 = arith.constant 0 : i32
    %2 = arith.cmpi ne, %1, %c0_i32_0 : i32
    scf.if %2 {
      %c0_8 = arith.constant 0 : index
      %c0_9 = arith.constant 0 : index
      %9 = vector.load %arg5[%c0_8, %c0_9] : memref<1x128xf32, #tpu.memory_space<vmem>>, vector<1x128xf32>
      %10 = vector.shape_cast %9 : vector<1x128xf32> to vector<1x128xf32>
      %11 = vector.broadcast %10 : vector<1x128xf32> to vector<8x128xf32>
      %c0_10 = arith.constant 0 : index
      %c0_11 = arith.constant 0 : index
      %12 = vector.load %arg6[%c0_10, %c0_11] : memref<8x128xf32, #tpu.memory_space<vmem>>, vector<8x128xf32>
      tpu.vector_store %arg6[%c0_10, %c0_11], %11 {strides = array<i32>} : memref<8x128xf32, #tpu.memory_space<vmem>>, vector<8x128xf32>,
    } else {
    }
    %c0 = arith.constant 0 : index
    %c0_1 = arith.constant 0 : index
    %3 = vector.load %arg6[%c0, %c0_1] : memref<8x128xf32, #tpu.memory_space<vmem>>, vector<8x128xf32>
    %c0_2 = arith.constant 0 : index
    %c0_3 = arith.constant 0 : index
    %4 = vector.load %arg3[%c0_2, %c0_3] : memref<8x128xf32, #tpu.memory_space<vmem>>, vector<8x128xf32>
    %c0_4 = arith.constant 0 : index
    %c0_5 = arith.constant 0 : index
    %5 = vector.load %arg4[%c0_4, %c0_5] : memref<128x128xf32, #tpu.memory_space<vmem>>, vector<128x128xf32>
    %cst = arith.constant dense<0.000000e+00> : vector<8x128xf32>
    %6 = tpu.matmul %4, %5, %cst {dimension_numbers = #tpu.dot_dimension_numbers<[1], [0], [0], [1], [0, 0, 1, 1], [], []>} : vector<8x128xf32>, vector<128x128xf32>, vector<8x128xf32> -> vector<8x128xf32>
    %7 = arith.addf %3, %6 : vector<8x128xf32>
    %c0_6 = arith.constant 0 : index
    %c0_7 = arith.constant 0 : index
    %8 = vector.load %arg6[%c0_6, %c0_7] : memref<8x128xf32, #tpu.memory_space<vmem>>, vector<8x128xf32>
    tpu.vector_store %arg6[%c0_6, %c0_7], %7 {strides = array<i32>} : memref<8x128xf32, #tpu.memory_space<vmem>>, vector<8x128xf32>,
    return
  }
  func.func @transform_0(%arg0: i32, %arg1: i32, %arg2: i32) -> (i32, i32) {
    %c0_i32 = arith.constant 0 : i32
    return %arg0, %arg2 : i32, i32
  }
  func.func @transform_1(%arg0: i32, %arg1: i32, %arg2: i32) -> (i32, i32) {
    %c0_i32 = arith.constant 0 : i32
    return %arg2, %arg1 : i32, i32
  }
  func.func @transform_2(%arg0: i32, %arg1: i32, %arg2: i32) -> (i32, i32) {
    %c0_i32 = arith.constant 0 : i32
    %c0_i32_0 = arith.constant 0 : i32
    return %c0_i32, %arg1 : i32, i32
  }
  func.func @transform_3(%arg0: i32, %arg1: i32, %arg2: i32) -> (i32, i32) {
    %c0_i32 = arith.constant 0 : i32
    return %arg0, %arg1 : i32, i32
  }
}

</mosaic_0001>

<bundles_post_ra>
// kernel: tpu_custom_call.1
= control target key start
LH: loop header
LB: loop body
LE: loop exit
PB: predicated region body
PF: predicated region fallthrough
CT: control target
= control target key end

     0   :  { %8 = vsyncpa [#allocation3], 0  ;;  %s390_s0 = inlined_call_operand.hbm [shape: f32[8,128], index: 0, kind: input, shape index: {}]   ;;  %s391_s1 = inlined_call_operand.hbm [shape: f32[128,128], index: 1, kind: input, shape index: {}]   ;;  %s392_s2 = inlined_call_operand.vmem [shape: f32[1,128], index: 2, kind: input, shape index: {}]   ;;  %s393_s3 = inlined_call_operand.hbm [shape: f32[8,128], index: 3, kind: output, shape index: {}]  }
   0x1   :  { %9 = vsyncpa [#allocation6], 0 }
   0x2   :  { %10 = vsyncpa [#allocation4], 0  ;;  %s316_s12 = smov [#allocation2]   ;;  %s317_s14 = smov [#allocation5]  }
   0x3   :  { %s17_s13 = sshll.u32 %s316_s12, 4  ;;  %s26_s15 = sshll.u32 %s317_s14, 4  ;;  %s18_s13 = int_to_ptr.vmem [resolvable:$true] %s17_s13  ;;  %s344_s15 = int_to_ptr.vmem [resolvable:$true] %s26_s15 }
   0x4   :  { %s244_s18 = scalar_lea.hbm %s390_s0, 128 }
   0x5   :  { %p245_p0 = scmp.ne.s32.totalorder %s390_s0, %s244_s18  ;;  %p248_p1 = scmp.lt.u32.totalorder %s244_s18, %s390_s0 }
   0x7   :  { %p250_p2 = pnand %p248_p1, %p245_p0 }
   0x9   :  { %253 = shalt.err (!%p250_p2)
}
   0xa   :  { %s254_s23 = scalar_lea.vmem %s18_s13, 128  ;;  %p259_p4 = scmp.lt.s32.totalorder %s18_s13, %s18_s13 }
   0xb   :  { %p255_p3 = scmp.ne.s32.totalorder %s18_s13, %s254_s23  ;;  %p260_p5 = scmp.lt.s32.totalorder %s254_s23, %s254_s23 }
   0xd   :  { %p261_p6 = por %p260_p5, %p259_p4 }
   0xf   :  { %p262_p7 = pnand %p261_p6, %p255_p3 }
  0x11   :  { %265 = shalt.err (!%p262_p7)
}
  0x12   :  { %20 = dma.hbm_to_vmem [thread:$0]  %s390_s0, 128, %s18_s13, [#allocation3]  }
  0x13   :  { %s266_s28 = scalar_lea.hbm %s391_s1, 2048 }
  0x14   :  { %p267_p8 = scmp.ne.s32.totalorder %s391_s1, %s266_s28  ;;  %p270_p9 = scmp.lt.u32.totalorder %s266_s28, %s391_s1 }
  0x16   :  { %p272_p10 = pnand %p270_p9, %p267_p8 }
  0x18   :  { %275 = shalt.err (!%p272_p10)
}
  0x19   :  { %s276_s6 = scalar_lea.vmem %s344_s15, 2048  ;;  %p281_p12 = scmp.lt.s32.totalorder %s344_s15, %s344_s15 }
  0x1a   :  { %p277_p11 = scmp.ne.s32.totalorder %s344_s15, %s276_s6  ;;  %p282_p13 = scmp.lt.s32.totalorder %s276_s6, %s276_s6 }
  0x1c   :  { %p283_p0 = por %p282_p13, %p281_p12 }
  0x1e   :  { %p284_p1 = pnand %p283_p0, %p277_p11 }
  0x20   :  { %287 = shalt.err (!%p284_p1)
}
  0x21   :  { %s318_s0 = smov 128   ;;  %s319_s7 = smov 8  }
  0x22   :  { %32 = dma.hbm_to_vmem [thread:$0]  %s391_s1, 2048, %s344_s15, [#allocation6], %s318_s0, %s318_s0, %s319_s7  }
  0x23   :  { %310 = dma.done.wait [#allocation3], 128  }
  0x24   :  { %311 = vsyncadd [#allocation3], 4294967168 }
  0x25   :  { %312 = dma.done.wait [#allocation6], 2048  }
  0x26   :  { %313 = vsyncadd [#allocation6], 4294965248  ;;  %v320_v0 = vmov 0.0|0.0   ;;  %vm321_vm0 = vmmov 0   ;;  %v322_v1 = vmov 0.0   ;;  %v55_v2 = vld [vmem:[#allocation5] sm:$0xff] }
  0x27   :  { %212 = vmatprep.subr.bf16.mxu0 %v320_v0  ;;  %209 = vmatprep.mubr.msk.f32.mxu0 %vm321_vm0, %v322_v1  ;;  %v56_v3 = vld [vmem:[#allocation5 + $0x8] sm:$0xff]  ;;  %v57_v4 = vld [vmem:[#allocation5 + $0x10] sm:$0xff]  ;;  %v58_v6 = vld [vmem:[#allocation5 + $0x18] sm:$0xff]  ;;  %s323_s11 = smov [#allocation7]  }
  0x28   :  { %v213_v5 = vpack.c.bf16 %v56_v3, %v55_v2  ;;  %v216_v7 = vpack.c.bf16 %v58_v6, %v57_v4  ;;  %v59_v8 = vld [vmem:[#allocation5 + $0x20] sm:$0xff]  ;;  %v60_v9 = vld [vmem:[#allocation5 + $0x28] sm:$0xff]  ;;  %v61_v11 = vld [vmem:[#allocation5 + $0x30] sm:$0xff]  ;;  %s149_s12 = sshll.u32 %s323_s11, 4  ;;  %s150_s12 = int_to_ptr.vmem [resolvable:$true] %s149_s12 }
  0x29   :  { %v219_v10 = vpack.c.bf16 %v60_v9, %v59_v8  ;;  %v62_v12 = vld [vmem:[#allocation5 + $0x38] sm:$0xff]  ;;  %v63_v14 = vld [vmem:[#allocation5 + $0x40] sm:$0xff]  ;;  %v64_v15 = vld [vmem:[#allocation5 + $0x48] sm:$0xff]  ;;  %s288_s13 = scalar_lea.vmem %s150_s12, 128  ;;  %p293_p3 = scmp.lt.s32.totalorder %s150_s12, %s150_s12 }
  0x2a   :  { %214 = vmatpush3.bf16.msra.mxu0 %v213_v5  ;;  %v222_v13 = vpack.c.bf16 %v62_v12, %v61_v11  ;;  %v225_v16 = vpack.c.bf16 %v64_v15, %v63_v14  ;;  %v65_v17 = vld [vmem:[#allocation5 + $0x50] sm:$0xff]  ;;  %v66_v18 = vld [vmem:[#allocation5 + $0x58] sm:$0xff]  ;;  %v67_v20 = vld [vmem:[#allocation5 + $0x60] sm:$0xff]  ;;  %p289_p2 = scmp.ne.s32.totalorder %s150_s12, %s288_s13  ;;  %p294_p4 = scmp.lt.s32.totalorder %s288_s13, %s288_s13 }
  0x2b   :  { %215 = vmatprep.subr.bf16.mxu0 %v320_v0  ;;  %v228_v19 = vpack.c.bf16 %v66_v18, %v65_v17  ;;  %v68_v21 = vld [vmem:[#allocation5 + $0x68] sm:$0xff]  ;;  %v69_v23 = vld [vmem:[#allocation5 + $0x70] sm:$0xff]  ;;  %v70_v24 = vld [vmem:[#allocation5 + $0x78] sm:$0xff] }
  0x2c   :  { %v231_v22 = vpack.c.bf16 %v68_v21, %v67_v20  ;;  %v234_v25 = vpack.c.bf16 %v70_v24, %v69_v23  ;;  %v54_v26 = vld [vmem:[#allocation2] sm:$0xff]  ;;  %p295_p5 = por %p294_p4, %p293_p3 }
  0x2d   :  { %v159_v27 = vld [vmem:[%s392_s2] ss:$0 sm:$0xff] }
  0x2e   :  { %217 = vmatpush3.bf16.msra.mxu0 %v216_v7  ;;  %p296_p6 = pnand %p295_p5, %p289_p2 }
  0x2f   :  { %218 = vmatprep.subr.bf16.mxu0 %v320_v0 }
  0x32   :  { %220 = vmatpush3.bf16.msra.mxu0 %v219_v10 }
  0x33   :  { %221 = vmatprep.subr.bf16.mxu0 %v320_v0 }
  0x36   :  { %223 = vmatpush3.bf16.msra.mxu0 %v222_v13 }
  0x37   :  { %224 = vmatprep.subr.bf16.mxu0 %v320_v0 }
  0x3a   :  { %226 = vmatpush3.bf16.msra.mxu0 %v225_v16 }
  0x3b   :  { %227 = vmatprep.subr.bf16.mxu0 %v320_v0 }
  0x3e   :  { %229 = vmatpush3.bf16.msra.mxu0 %v228_v19 }
  0x3f   :  { %230 = vmatprep.subr.bf16.mxu0 %v320_v0 }
  0x42   :  { %232 = vmatpush3.bf16.msra.mxu0 %v231_v22 }
  0x43   :  { %233 = vmatprep.subr.bf16.mxu0 %v320_v0 }
  0x46   :  { %235 = vmatpush3.bf16.msra.mxu0 %v234_v25 }
  0x49   :  { %210 = vmatmul.mubr.f32.vlgmr.msra.gmra.mrb[0].mxu0 %v54_v26 }
 0x11c   :  { %v137_v28 = vpop.f32.mrb[0].mxu0 }
 0x11d   :  { %v141_v29 = vadd.f32 %v159_v27, %v137_v28  ;;  %v211_v30 = vpop.f32.mrb[1].mxu0 }
 0x11f   :  { %142 = vst [vmem:[#allocation7] sm:$0xff] %v141_v29 }
 0x120   :  { %299 = shalt.err (!%p296_p6)
}
 0x121   :  { %s300_s16 = scalar_lea.hbm %s393_s3, 128 }
 0x122   :  { %p301_p7 = scmp.ne.s32.totalorder %s393_s3, %s300_s16  ;;  %p304_p8 = scmp.lt.u32.totalorder %s300_s16, %s393_s3 }
 0x124   :  { %p306_p9 = pnand %p304_p8, %p301_p7 }
 0x126   :  { %309 = shalt.err (!%p306_p9)
}
 0x127   :  { %152 = dma.vmem_to_hbm [thread:$0]  %s150_s12, 128, %s393_s3, [#allocation4]  }
 0x128   :  { %314 = dma.done.wait [#allocation4], 128  }
 0x129   :  { %315 = vsyncadd [#allocation4], 4294967168 }
 0x12a   :  { %156 = vsyncpa [#allocation3], 1 }
 0x12b   :  { %157 = vsyncpa [#allocation6], 1 }
 0x12c   :  { %158 = vsyncpa [#allocation4], 1 }

</bundles_post_ra>
